<compile_context>
chip_gen: v5e
topology: v5e:2x2
jax: 0.10.0
libtpu: 0.0.40
codegen_flags: <defaults>
</compile_context>

<pallas_src>
import jax
import jax.numpy as jnp
from jax.experimental import pallas as pl
from jax.experimental.pallas import tpu as pltpu

LANE = 128
SUBLANE = 8
TILE_ELEMS = LANE * SUBLANE  # 1024


def _mish_kernel(x_ref, o_ref):
    x = x_ref[...].astype(jnp.float32)
    # Mish with a single exp:  t = e^x, d = t*(t+2)  =>  tanh(softplus(x)) = d/(d+2)
    t = jnp.exp(jnp.minimum(x, 20.0))      # clamp: f32 exp overflows above ~88
    d = t * (t + 2.0)
    den = d + 2.0
    r = pl.reciprocal(den, approx=True)    # EUP vrcp (approx) instead of a full divide
    r = r * (2.0 - den * r)                # Newton step 1 (VPU only)
    r = r * (2.0 - den * r)                # Newton step 2 (VPU only) -> ~f32-exact 1/den
    y = x * d * r
    y = jnp.where(x > 20.0, x, y)          # for x > 20, tanh(softplus(x)) == 1 in f32
    o_ref[...] = y.astype(o_ref.dtype)


def _mish_jnp(x: jax.Array) -> jax.Array:
    """Plain-jnp Mish (used for the tiny unaligned tail and as reference)."""
    x32 = x.astype(jnp.float32)
    return (x32 * jnp.tanh(jnp.logaddexp(x32, 0.0))).astype(x.dtype)


def mish(x: jax.Array, *, block_rows: int = 4096) -> jax.Array:
    """Elementwise Mish via a Pallas TPU kernel. Accepts any shape / float dtype."""
    orig_shape = x.shape
    orig_dtype = x.dtype

    flat = x.reshape(-1)
    n = flat.shape[0]

    # Split into an (8*128)-aligned bulk (kernel) and a tiny tail (<1024 elems, plain jnp).
    n_aligned = (n // TILE_ELEMS) * TILE_ELEMS
    tail = n - n_aligned

    parts = []
    if n_aligned > 0:
        rows = n_aligned // LANE                      # multiple of 8
        br = min(block_rows, rows)
        br = max(SUBLANE, (br // SUBLANE) * SUBLANE)  # keep (8,128)-tileable block
        grid = (pl.cdiv(rows, br),)                   # partial last block handled by Pallas

        x2d = flat[:n_aligned].reshape(rows, LANE)    # lane-dense slab

        out2d = pl.pallas_call(
            _mish_kernel,
            out_shape=jax.ShapeDtypeStruct((rows, LANE), orig_dtype),
            grid_spec=pltpu.PrefetchScalarGridSpec(
                num_scalar_prefetch=0,
                grid=grid,
                in_specs=[pl.BlockSpec((br, LANE), lambda i: (i, 0))],
                out_specs=pl.BlockSpec((br, LANE), lambda i: (i, 0)),
            ),
            compiler_params=pltpu.CompilerParams(
                dimension_semantics=("parallel",),    # megacore sharding on v7x
            ),
        )(x2d)
        parts.append(out2d.reshape(-1))

    if tail > 0:
        parts.append(_mish_jnp(flat[n_aligned:]))

    out_flat = parts[0] if len(parts) == 1 else jnp.concatenate(parts)
    return out_flat.reshape(orig_shape)


def mish_reference(x: jax.Array) -> jax.Array:
    return _mish_jnp(x)


if __name__ == "__main__":
    key = jax.random.PRNGKey(0)
    # NCHW input, consistent with typical conv-net usage of Mish
    x = jax.random.normal(key, (2, 4, 16, 16), dtype=jnp.float32) * 3.0

    y = mish(x)
    jax.block_until_ready(y)

    y_ref = mish_reference(x)
    assert y.shape == x.shape and y.dtype == x.dtype
    assert jnp.allclose(y, y_ref, atol=1e-5, rtol=1e-5), "mismatch vs reference"

    print("KERNEL_OK")
</pallas_src>

<mosaic_0001>
module attributes {stable_mosaic.version = 11 : i64} {
  func.func @_mish_kernel(%arg0: i32, %arg1: memref<16x128xf32, #tpu.memory_space<vmem>>, %arg2: memref<16x128xf32, #tpu.memory_space<vmem>>) attributes {dimension_semantics = [#tpu.dimension_semantics<parallel>], iteration_bounds = array<i64: 1>, scalar_prefetch = 0 : i64, scratch_operands = 0 : i64, tpu.core_type = #tpu.core_type<tc>, window_params = [{transform_indices = @transform_0, window_bounds = array<i64: 16, 128>}, {transform_indices = @transform_1, window_bounds = array<i64: 16, 128>}]} {
    %c0 = arith.constant 0 : index
    %c0_0 = arith.constant 0 : index
    %0 = vector.load %arg1[%c0, %c0_0] : memref<16x128xf32, #tpu.memory_space<vmem>>, vector<16x128xf32>
    %cst = arith.constant 2.000000e+01 : f32
    %1 = vector.broadcast %cst : f32 to vector<16x128xf32>
    %2 = arith.minimumf %0, %1 : vector<16x128xf32>
    %3 = math.exp %2 : vector<16x128xf32>
    %cst_1 = arith.constant 2.000000e+00 : f32
    %4 = vector.broadcast %cst_1 : f32 to vector<16x128xf32>
    %5 = arith.addf %3, %4 : vector<16x128xf32>
    %6 = arith.mulf %3, %5 : vector<16x128xf32>
    %cst_2 = arith.constant 2.000000e+00 : f32
    %7 = vector.broadcast %cst_2 : f32 to vector<16x128xf32>
    %8 = arith.addf %6, %7 : vector<16x128xf32>
    %9 = tpu.reciprocal %8 {approx = true} : vector<16x128xf32> -> vector<16x128xf32>
    %10 = arith.mulf %8, %9 : vector<16x128xf32>
    %cst_3 = arith.constant 2.000000e+00 : f32
    %11 = vector.broadcast %cst_3 : f32 to vector<16x128xf32>
    %12 = arith.subf %11, %10 : vector<16x128xf32>
    %13 = arith.mulf %9, %12 : vector<16x128xf32>
    %14 = arith.mulf %8, %13 : vector<16x128xf32>
    %cst_4 = arith.constant 2.000000e+00 : f32
    %15 = vector.broadcast %cst_4 : f32 to vector<16x128xf32>
    %16 = arith.subf %15, %14 : vector<16x128xf32>
    %17 = arith.mulf %13, %16 : vector<16x128xf32>
    %18 = arith.mulf %0, %6 : vector<16x128xf32>
    %19 = arith.mulf %18, %17 : vector<16x128xf32>
    %cst_5 = arith.constant 2.000000e+01 : f32
    %20 = vector.broadcast %cst_5 : f32 to vector<16x128xf32>
    %21 = arith.cmpf ogt, %0, %20 : vector<16x128xf32>
    %22 = arith.select %21, %0, %19 : vector<16x128xi1>, vector<16x128xf32>
    %c0_6 = arith.constant 0 : index
    %c0_7 = arith.constant 0 : index
    %23 = vector.load %arg2[%c0_6, %c0_7] : memref<16x128xf32, #tpu.memory_space<vmem>>, vector<16x128xf32>
    tpu.vector_store %arg2[%c0_6, %c0_7], %22 {strides = array<i32>} : memref<16x128xf32, #tpu.memory_space<vmem>>, vector<16x128xf32>,
    return
  }
  func.func @transform_0(%arg0: i32) -> (i32, i32) {
    %c0_i32 = arith.constant 0 : i32
    %c0_i32_0 = arith.constant 0 : i32
    return %arg0, %c0_i32 : i32, i32
  }
  func.func @transform_1(%arg0: i32) -> (i32, i32) {
    %c0_i32 = arith.constant 0 : i32
    %c0_i32_0 = arith.constant 0 : i32
    return %arg0, %c0_i32 : i32, i32
  }
}

</mosaic_0001>

<bundles_post_ra>
// kernel: tpu_custom_call.1
= control target key start
LH: loop header
LB: loop body
LE: loop exit
PB: predicated region body
PF: predicated region fallthrough
CT: control target
= control target key end

     0   :  { %6 = vsyncpa [#allocation3], 0  ;;  %s172_s0 = inlined_call_operand.hbm [shape: f32[16,128], index: 0, kind: input, shape index: {}]   ;;  %s173_s1 = inlined_call_operand.hbm [shape: f32[16,128], index: 1, kind: output, shape index: {}]  }
   0x1   :  { %7 = vsyncpa [#allocation4], 0  ;;  %s12_s8 = sshll.u32 %s172_s0, 4  ;;  %s146_s9 = smov [#allocation2]   ;;  %s13_s8 = int_to_ptr.hbm [resolvable:$true] %s12_s8 }
   0x2   :  { %s14_s10 = sshll.u32 %s146_s9, 4  ;;  %s147_s11 = smov 128   ;;  %s15_s10 = int_to_ptr.vmem [resolvable:$true] %s14_s10 }
   0x3   :  { %s148_s12 = smov 8  }
   0x4   :  { %20 = dma.hbm_to_vmem [thread:$0]  %s13_s8, 256, %s15_s10, [#allocation3], %s147_s11, %s147_s11, %s148_s12  }
   0x5   :  { %142 = dma.done.wait [#allocation3], 256  }
   0x6   :  { %143 = vsyncadd [#allocation3], 4294967040  ;;  %v25_v0 = vld [vmem:[#allocation2] sm:$0xff]  ;;  %v26_v1 = vld [vmem:[#allocation2 + $0x8] sm:$0xff]  ;;  %s149_s0 = smov [#allocation5]   ;;  %s69_s16 = sshll.u32 %s173_s1, 4  ;;  %s70_s16 = int_to_ptr.hbm [resolvable:$true] %s69_s16 }
   0x7   :  { %v27_v2 = vmin.f32 %v25_v0, 20.0  ;;  %v28_v3 = vmin.f32 %v26_v1, 20.0  ;;  %vm57_vm0 = vcmp.gt.f32.partialorder %v25_v0, 20.0  ;;  %s67_s13 = sshll.u32 %s149_s0, 4  ;;  %vm58_vm1 = vcmp.gt.f32.partialorder %v26_v1, 20.0  ;;  %s68_s13 = int_to_ptr.vmem [resolvable:$true] %s67_s13 }
   0x9   :  { %v29_v4 = vmul.f32 1.442695, %v27_v2  ;;  %v31_v5 = vmul.f32 1.442695, %v28_v3 }
   0xb   :  { %86 = vpow2.f32 %v29_v4 }
   0xc   :  { %88 = vpow2.f32 %v31_v5 }
  0x11   :  { %v87_v6 = vpop.eup %86 }
  0x12   :  { %v89_v7 = vpop.eup %88  ;;  %v33_v8 = vadd.f32 2.0, %v87_v6 }
  0x13   :  { %v34_v9 = vadd.f32 2.0, %v89_v7 }
  0x14   :  { %v35_v10 = vmul.f32 %v87_v6, %v33_v8 }
  0x15   :  { %v36_v11 = vmul.f32 %v89_v7, %v34_v9 }
  0x16   :  { %v37_v12 = vadd.f32 2.0, %v35_v10  ;;  %v53_v25 = vmul.f32 %v35_v10, %v25_v0 }
  0x17   :  { %v38_v13 = vadd.f32 2.0, %v36_v11  ;;  %v54_v27 = vmul.f32 %v36_v11, %v26_v1 }
  0x18   :  { %90 = vrcp.f32 %v37_v12 }
  0x19   :  { %92 = vrcp.f32 %v38_v13 }
  0x1e   :  { %v91_v14 = vpop.eup %90 }
  0x1f   :  { %v93_v15 = vpop.eup %92  ;;  %v41_v16 = vmul.f32 %v91_v14, %v37_v12 }
  0x20   :  { %v42_v17 = vmul.f32 %v93_v15, %v38_v13 }
  0x21   :  { %v43_v18 = vsub.f32 2.0, %v41_v16 }
  0x22   :  { %v44_v19 = vsub.f32 2.0, %v42_v17 }
  0x23   :  { %v45_v20 = vmul.f32 %v91_v14, %v43_v18 }
  0x24   :  { %v46_v21 = vmul.f32 %v93_v15, %v44_v19 }
  0x25   :  { %v47_v22 = vmul.f32 %v45_v20, %v37_v12 }
  0x26   :  { %v48_v23 = vmul.f32 %v46_v21, %v38_v13 }
  0x27   :  { %v49_v24 = vsub.f32 2.0, %v47_v22 }
  0x28   :  { %v50_v26 = vsub.f32 2.0, %v48_v23 }
  0x29   :  { %v51_v28 = vmul.f32 %v49_v24, %v45_v20 }
  0x2a   :  { %v52_v29 = vmul.f32 %v50_v26, %v46_v21 }
  0x2b   :  { %v55_v30 = vmul.f32 %v53_v25, %v51_v28 }
  0x2c   :  { %v56_v31 = vmul.f32 %v54_v27, %v52_v29 }
  0x2d   :  { %v59_v32 = vsel %vm57_vm0, %v25_v0, %v55_v30 }
  0x2e   :  { %61 = vst [vmem:[#allocation5] sm:$0xff] %v59_v32  ;;  %v60_v33 = vsel %vm58_vm1, %v26_v1, %v56_v31 }
  0x2f   :  { %62 = vst [vmem:[#allocation5 + $0x8] sm:$0xff] %v60_v33 }
  0x30   :  { %75 = dma.vmem_to_hbm [thread:$0]  %s68_s13, 256, %s70_s16, [#allocation4], %s147_s11, %s147_s11, %s148_s12  }
  0x31   :  { %144 = dma.done.wait [#allocation4], 256  }
  0x32   :  { %145 = vsyncadd [#allocation4], 4294967040 }
  0x33   :  { %80 = vsyncpa [#allocation3], 1 }
  0x34   :  { %81 = vsyncpa [#allocation4], 1 }

</bundles_post_ra>
